<compile_context>
chip_gen: v7x
topology: tpu7x:2x2x1
jax: 0.10.0
libtpu: 0.0.40
codegen_flags: <defaults>
</compile_context>

<pallas_src>
import math

import jax
import jax.numpy as jnp
from jax.experimental import pallas as pl
from jax.experimental.pallas import tpu as pltpu


def _band_offsets(dim_inputs):
    offs, off = [], 0
    for d in dim_inputs:
        offs.append(off)
        off += d
    return tuple(offs), off


def _make_bandsplit_kernel(dim_inputs, dim):
    band_offs, _ = _band_offsets(dim_inputs)

    def kernel(x_ref, w_ref, b_ref, o_ref):
        # x_ref: (TILE_N, F_total)     activations (f32 or bf16)
        # w_ref: (F_total, dim)        (sqrt(d_b)*gamma_b) * W_b^T, concatenated
        # b_ref: (1, nb*dim) f32       biases, concatenated
        # o_ref: (TILE_N, nb*dim) f32
        for bidx, (o0, d_b) in enumerate(zip(band_offs, dim_inputs)):
            xb = x_ref[:, o0:o0 + d_b].astype(jnp.float32)       # (TILE_N, d_b)
            ss = jnp.sum(xb * xb, axis=-1, keepdims=True)         # (TILE_N, 1)
            inv = jax.lax.rsqrt(jnp.maximum(ss, 1e-24))           # == 1/max(||x||, 1e-12)
            xn = xb * inv                                         # unit-norm rows (f32)
            wb = w_ref[o0:o0 + d_b, :]                            # (d_b, dim)
            y = jnp.dot(xn.astype(wb.dtype), wb,
                        preferred_element_type=jnp.float32)       # (TILE_N, dim), f32 acc
            y = y + b_ref[:, bidx * dim:(bidx + 1) * dim]
            o_ref[:, bidx * dim:(bidx + 1) * dim] = y.astype(o_ref.dtype)

    return kernel


def _choose_tile_n(N, F_total, nb, dim, x_bytes, w_bytes,
                   out_bytes=4, vmem_budget=24 * 1024 * 1024, max_tile_n=None):
    """Pick TILE_N so 2x(x tile) + 2x(out tile) + resident params fit the budget
    (conservative w.r.t. v7x's 64 MiB physical / 32 MiB scoped VMEM)."""
    resident = F_total * dim * w_bytes + nb * dim * 4
    per_row = 2 * F_total * x_bytes + 2 * nb * dim * out_bytes
    avail = max(vmem_budget - resident, 16 * per_row)
    tile = int(avail // per_row)
    tile = (tile // 16) * 16                       # sublane granule (f32:8, bf16:16)
    tile = max(16, min(tile, 1024))
    tile = min(tile, ((N + 15) // 16) * 16)        # no point exceeding (padded) N
    if max_tile_n is not None:
        tile = min(tile, max(8, (max_tile_n // 8) * 8))
    return max(8, tile)


def bandsplit_forward(x, params, dim_inputs, dim, *,
                      compute_dtype=jnp.float32, max_tile_n=None):
    """x: (B, T, F_total) with F_total == sum(dim_inputs).
    params: list of dicts with 'gamma' (d_b,), 'weight' (dim, d_b), 'bias' (dim,).
    returns: (B, T, num_bands, dim) float32 -- matches torch.stack(outs, dim=-2)."""
    B, T, F_total = x.shape
    assert F_total == sum(dim_inputs)
    nb = len(dim_inputs)
    N = B * T

    # ---- pack parameters once (tiny; no activation copies) ----
    # Fold gamma_b * sqrt(d_b) into the rows of W_b^T.
    w_cat = jnp.concatenate(
        [(p["weight"].astype(jnp.float32).T
          * (jnp.float32(math.sqrt(d)) * p["gamma"].astype(jnp.float32))[:, None]
          ).astype(compute_dtype)
         for d, p in zip(dim_inputs, params)], axis=0)                      # (F, dim)
    b_cat = jnp.concatenate(
        [p["bias"].astype(jnp.float32) for p in params])[None, :]           # (1, nb*dim)

    xf = x.reshape(N, F_total).astype(compute_dtype)   # reshape is free; cast only if bf16

    x_bytes = jnp.dtype(compute_dtype).itemsize
    tile_n = _choose_tile_n(N, F_total, nb, dim, x_bytes, x_bytes,
                            max_tile_n=max_tile_n)
    n_tiles = pl.cdiv(N, tile_n)

    kernel = _make_bandsplit_kernel(tuple(dim_inputs), dim)

    cost = pl.CostEstimate(
        flops=2 * N * F_total * dim + 3 * N * F_total,
        transcendentals=N * nb,
        bytes_accessed=N * F_total * x_bytes + F_total * dim * x_bytes
                       + N * nb * dim * 4,
    )

    out = pl.pallas_call(
        kernel,
        out_shape=jax.ShapeDtypeStruct((N, nb * dim), jnp.float32),
        grid_spec=pl.GridSpec(
            grid=(n_tiles,),
            in_specs=[
                pl.BlockSpec((tile_n, F_total), lambda i: (i, 0)),   # x tile (pipelined)
                pl.BlockSpec((F_total, dim), lambda i: (0, 0)),      # weights (resident)
                pl.BlockSpec((1, nb * dim), lambda i: (0, 0)),       # bias (resident)
            ],
            out_specs=pl.BlockSpec((tile_n, nb * dim), lambda i: (i, 0)),  # lane-dense
        ),
        compiler_params=pltpu.CompilerParams(
            dimension_semantics=("parallel",),          # megacore sharding on v7x
            vmem_limit_bytes=32 * 1024 * 1024,
        ),
        cost_estimate=cost,
    )(xf, w_cat, b_cat)

    return out.reshape(B, T, nb, dim)


def _reference(x, params, dim_inputs, dim):
    # pure-JAX reference of the PyTorch forward
    outs = []
    off = 0
    for d_b, p in zip(dim_inputs, params):
        xb = x[..., off:off + d_b]
        off += d_b
        nrm = jnp.maximum(jnp.sqrt(jnp.sum(xb * xb, axis=-1, keepdims=True)), 1e-12)
        xn = xb / nrm * math.sqrt(d_b) * p["gamma"]
        outs.append(xn @ p["weight"].T + p["bias"])
    return jnp.stack(outs, axis=-2)


def init_params(key, dim_inputs, dim):
    params = []
    for i, d_b in enumerate(dim_inputs):
        kw, kb = jax.random.split(jax.random.fold_in(key, i))
        bound = 1.0 / math.sqrt(d_b)  # PyTorch Linear default init bounds
        params.append({
            "gamma": jnp.ones((d_b,), jnp.float32),
            "weight": jax.random.uniform(kw, (dim, d_b), jnp.float32, -bound, bound),
            "bias": jax.random.uniform(kb, (dim,), jnp.float32, -bound, bound),
        })
    return params


if __name__ == "__main__":
    key = jax.random.PRNGKey(0)
    dim_inputs = (8, 16, 24)
    dim = 32

    kx, kp, kx2 = jax.random.split(key, 3)
    params = init_params(kp, dim_inputs, dim)

    # small config (single row tile)
    B, T = 2, 8
    x = jax.random.normal(kx, (B, T, sum(dim_inputs)), jnp.float32)
    y = jax.block_until_ready(bandsplit_forward(x, params, dim_inputs, dim))
    y_ref = _reference(x, params, dim_inputs, dim)
    assert y.shape == (B, T, len(dim_inputs), dim), y.shape
    assert jnp.allclose(y, y_ref, atol=1e-5, rtol=1e-5), "f32 mismatch (small)"

    # larger config with a forced multi-tile grid (exercises the N-tiled pipeline)
    B2, T2 = 2, 128
    x2 = jax.random.normal(kx2, (B2, T2, sum(dim_inputs)), jnp.float32)
    y2 = jax.block_until_ready(
        bandsplit_forward(x2, params, dim_inputs, dim, max_tile_n=64))
    y2_ref = _reference(x2, params, dim_inputs, dim)
    assert jnp.allclose(y2, y2_ref, atol=1e-5, rtol=1e-5), "f32 mismatch (tiled)"

    # bf16 activation/weight path (halves HBM traffic; f32 accumulation)
    y3 = jax.block_until_ready(
        bandsplit_forward(x2, params, dim_inputs, dim,
                          compute_dtype=jnp.bfloat16, max_tile_n=64))
    assert jnp.allclose(y3, y2_ref, atol=5e-2, rtol=5e-2), "bf16 mismatch"

    print("KERNEL_OK")
</pallas_src>

<mosaic_0001>
module attributes {stable_mosaic.version = 11 : i64} {
  func.func @kernel(%arg0: i32, %arg1: memref<16x48xf32, #tpu.memory_space<vmem>>, %arg2: memref<48x32xf32, #tpu.memory_space<vmem>>, %arg3: memref<1x96xf32, #tpu.memory_space<vmem>>, %arg4: memref<16x96xf32, #tpu.memory_space<vmem>>) attributes {dimension_semantics = [#tpu.dimension_semantics<parallel>], iteration_bounds = array<i64: 1>, scalar_prefetch = 0 : i64, scratch_operands = 0 : i64, tpu.core_type = #tpu.core_type<tc>, window_params = [{transform_indices = @transform_0, window_bounds = array<i64: 16, 48>}, {pipeline_mode = #tpu.pipeline_mode<synchronous>, transform_indices = @transform_1, window_bounds = array<i64: 48, 32>}, {pipeline_mode = #tpu.pipeline_mode<synchronous>, transform_indices = @transform_2, window_bounds = array<i64: 1, 96>}, {transform_indices = @transform_3, window_bounds = array<i64: 16, 96>}]} {
    %c0 = arith.constant 0 : index
    %c0_0 = arith.constant 0 : index
    %0 = vector.load %arg1[%c0, %c0_0] : memref<16x48xf32, #tpu.memory_space<vmem>>, vector<16x8xf32>
    %1 = arith.mulf %0, %0 : vector<16x8xf32>
    %cst = arith.constant dense<0.000000e+00> : vector<16xf32>
    %2 = vector.multi_reduction <add>, %1, %cst [1] : vector<16x8xf32> to vector<16xf32>
    %3 = vector.shape_cast %2 : vector<16xf32> to vector<16x1xf32>
    %cst_1 = arith.constant 1.000000e-24 : f32
    %4 = vector.broadcast %cst_1 : f32 to vector<16x1xf32>
    %5 = arith.maximumf %3, %4 : vector<16x1xf32>
    %6 = math.rsqrt %5 : vector<16x1xf32>
    %7 = vector.broadcast %6 : vector<16x1xf32> to vector<16x8xf32>
    %8 = arith.mulf %0, %7 : vector<16x8xf32>
    %c0_2 = arith.constant 0 : index
    %c0_3 = arith.constant 0 : index
    %9 = vector.load %arg2[%c0_2, %c0_3] : memref<48x32xf32, #tpu.memory_space<vmem>>, vector<8x32xf32>
    %cst_4 = arith.constant dense<0.000000e+00> : vector<16x32xf32>
    %10 = tpu.matmul %8, %9, %cst_4 {dimension_numbers = #tpu.dot_dimension_numbers<[1], [0], [0], [1], [0, 0, 1, 1], [], []>} : vector<16x8xf32>, vector<8x32xf32>, vector<16x32xf32> -> vector<16x32xf32>
    %c0_5 = arith.constant 0 : index
    %c0_6 = arith.constant 0 : index
    %11 = vector.load %arg3[%c0_5, %c0_6] : memref<1x96xf32, #tpu.memory_space<vmem>>, vector<1x32xf32>
    %12 = vector.broadcast %11 : vector<1x32xf32> to vector<16x32xf32>
    %13 = arith.addf %10, %12 : vector<16x32xf32>
    %c0_7 = arith.constant 0 : index
    %c0_8 = arith.constant 0 : index
    %14 = vector.load %arg4[%c0_7, %c0_8] : memref<16x96xf32, #tpu.memory_space<vmem>>, vector<16x32xf32>
    tpu.vector_store %arg4[%c0_7, %c0_8], %13 {strides = array<i32>} : memref<16x96xf32, #tpu.memory_space<vmem>>, vector<16x32xf32>,
    %c0_9 = arith.constant 0 : index
    %c8 = arith.constant 8 : index
    %15 = vector.load %arg1[%c0_9, %c8] : memref<16x48xf32, #tpu.memory_space<vmem>>, vector<16x16xf32>
    %16 = arith.mulf %15, %15 : vector<16x16xf32>
    %cst_10 = arith.constant dense<0.000000e+00> : vector<16xf32>
    %17 = vector.multi_reduction <add>, %16, %cst_10 [1] : vector<16x16xf32> to vector<16xf32>
    %18 = vector.shape_cast %17 : vector<16xf32> to vector<16x1xf32>
    %cst_11 = arith.constant 1.000000e-24 : f32
    %19 = vector.broadcast %cst_11 : f32 to vector<16x1xf32>
    %20 = arith.maximumf %18, %19 : vector<16x1xf32>
    %21 = math.rsqrt %20 : vector<16x1xf32>
    %22 = vector.broadcast %21 : vector<16x1xf32> to vector<16x16xf32>
    %23 = arith.mulf %15, %22 : vector<16x16xf32>
    %c8_12 = arith.constant 8 : index
    %c0_13 = arith.constant 0 : index
    %24 = vector.load %arg2[%c8_12, %c0_13] : memref<48x32xf32, #tpu.memory_space<vmem>>, vector<16x32xf32>
    %cst_14 = arith.constant dense<0.000000e+00> : vector<16x32xf32>
    %25 = tpu.matmul %23, %24, %cst_14 {dimension_numbers = #tpu.dot_dimension_numbers<[1], [0], [0], [1], [0, 0, 1, 1], [], []>} : vector<16x16xf32>, vector<16x32xf32>, vector<16x32xf32> -> vector<16x32xf32>
    %c0_15 = arith.constant 0 : index
    %c32 = arith.constant 32 : index
    %26 = vector.load %arg3[%c0_15, %c32] : memref<1x96xf32, #tpu.memory_space<vmem>>, vector<1x32xf32>
    %27 = vector.broadcast %26 : vector<1x32xf32> to vector<16x32xf32>
    %28 = arith.addf %25, %27 : vector<16x32xf32>
    %c0_16 = arith.constant 0 : index
    %c32_17 = arith.constant 32 : index
    %29 = vector.load %arg4[%c0_16, %c32_17] : memref<16x96xf32, #tpu.memory_space<vmem>>, vector<16x32xf32>
    tpu.vector_store %arg4[%c0_16, %c32_17], %28 {strides = array<i32>} : memref<16x96xf32, #tpu.memory_space<vmem>>, vector<16x32xf32>,
    %c0_18 = arith.constant 0 : index
    %c24 = arith.constant 24 : index
    %30 = vector.load %arg1[%c0_18, %c24] : memref<16x48xf32, #tpu.memory_space<vmem>>, vector<16x24xf32>
    %31 = arith.mulf %30, %30 : vector<16x24xf32>
    %cst_19 = arith.constant dense<0.000000e+00> : vector<16xf32>
    %32 = vector.multi_reduction <add>, %31, %cst_19 [1] : vector<16x24xf32> to vector<16xf32>
    %33 = vector.shape_cast %32 : vector<16xf32> to vector<16x1xf32>
    %cst_20 = arith.constant 1.000000e-24 : f32
    %34 = vector.broadcast %cst_20 : f32 to vector<16x1xf32>
    %35 = arith.maximumf %33, %34 : vector<16x1xf32>
    %36 = math.rsqrt %35 : vector<16x1xf32>
    %37 = vector.broadcast %36 : vector<16x1xf32> to vector<16x24xf32>
    %38 = arith.mulf %30, %37 : vector<16x24xf32>
    %c24_21 = arith.constant 24 : index
    %c0_22 = arith.constant 0 : index
    %39 = vector.load %arg2[%c24_21, %c0_22] : memref<48x32xf32, #tpu.memory_space<vmem>>, vector<24x32xf32>
    %cst_23 = arith.constant dense<0.000000e+00> : vector<16x32xf32>
    %40 = tpu.matmul %38, %39, %cst_23 {dimension_numbers = #tpu.dot_dimension_numbers<[1], [0], [0], [1], [0, 0, 1, 1], [], []>} : vector<16x24xf32>, vector<24x32xf32>, vector<16x32xf32> -> vector<16x32xf32>
    %c0_24 = arith.constant 0 : index
    %c64 = arith.constant 64 : index
    %41 = vector.load %arg3[%c0_24, %c64] : memref<1x96xf32, #tpu.memory_space<vmem>>, vector<1x32xf32>
    %42 = vector.broadcast %41 : vector<1x32xf32> to vector<16x32xf32>
    %43 = arith.addf %40, %42 : vector<16x32xf32>
    %c0_25 = arith.constant 0 : index
    %c64_26 = arith.constant 64 : index
    %44 = vector.load %arg4[%c0_25, %c64_26] : memref<16x96xf32, #tpu.memory_space<vmem>>, vector<16x32xf32>
    tpu.vector_store %arg4[%c0_25, %c64_26], %43 {strides = array<i32>} : memref<16x96xf32, #tpu.memory_space<vmem>>, vector<16x32xf32>,
    return
  }
  func.func @transform_0(%arg0: i32) -> (i32, i32) {
    %c0_i32 = arith.constant 0 : i32
    %c0_i32_0 = arith.constant 0 : i32
    return %arg0, %c0_i32 : i32, i32
  }
  func.func @transform_1(%arg0: i32) -> (i32, i32) {
    %c0_i32 = arith.constant 0 : i32
    %c0_i32_0 = arith.constant 0 : i32
    %c0_i32_1 = arith.constant 0 : i32
    return %c0_i32, %c0_i32_0 : i32, i32
  }
  func.func @transform_2(%arg0: i32) -> (i32, i32) {
    %c0_i32 = arith.constant 0 : i32
    %c0_i32_0 = arith.constant 0 : i32
    %c0_i32_1 = arith.constant 0 : i32
    return %c0_i32, %c0_i32_0 : i32, i32
  }
  func.func @transform_3(%arg0: i32) -> (i32, i32) {
    %c0_i32 = arith.constant 0 : i32
    %c0_i32_0 = arith.constant 0 : i32
    return %arg0, %c0_i32 : i32, i32
  }
}

</mosaic_0001>

<bundles_post_ra>
// kernel: tpu_custom_call.1
= control target key start
LH: loop header
LB: loop body
LE: loop exit
PB: predicated region body
PF: predicated region fallthrough
CT: control target
= control target key end

     0   :  { %s603_s0 = inlined_call_operand.vmem [shape: f32[16,48], index: 0, kind: input, shape index: {}]   ;;  %s604_s1 = inlined_call_operand.vmem [shape: f32[48,32], index: 1, kind: input, shape index: {}]   ;;  %s605_s2 = inlined_call_operand.vmem [shape: f32[1,96], index: 2, kind: input, shape index: {}]   ;;  %s606_s3 = inlined_call_operand.hbm [shape: f32[16,96], index: 3, kind: output, shape index: {}]  }
   0x1   :  { %v530_v0 = vld [vmem:[%s603_s0] sm:$0xff]  ;;  %v535_v1 = vld [vmem:[%s603_s0 + $0x8] sm:$0xff] }
   0x2   :  { %v126_v2 = vmul.f32 %v530_v0, %v530_v0 }
   0x3   :  { %8 = vsyncpa [#allocation3], 0  ;;  %s499_s16 = smov 120   ;;  %s500_s17 = smov 104   ;;  %v127_v3 = vmul.f32 %v535_v1, %v535_v1  ;;  %vm136_vm0 = vcmask 130048   ;;  %vm268_vm1 = vcmask 195584  }
   0x4   :  { %130 = vrot.lane.b32.xlu0 %v126_v2, %s499_s16  ;;  %262 = vrot.lane.b32.xlu1 %v126_v2, %s500_s17  ;;  %vm19_vm2 = vcmask 64512   ;;  %v32_v14 = vld [vmem:[%s604_s1] sm:$0xff]  ;;  %v149_v15 = vld [vmem:[%s604_s1 + $0x8] sm:$0xff]  ;;  %s501_s30 = smov 96   ;;  %s502_s4 = smov 64   ;;  %vm121_vm3 = vcmask 261120  }
   0x5   :  { %v20_v12 = vsel %vm19_vm2, %v126_v2, 0.0  ;;  %v23_v13 = vsel %vm19_vm2, %v127_v3, 0.0  ;;  %426 = vmatprep.subr.mxu1 %v32_v14  ;;  %v150_v16 = vld [vmem:[%s604_s1 + $0x10] sm:$0xff]  ;;  %v281_v20 = vld [vmem:[%s604_s1 + $0x18] sm:$0xff]  ;;  %v282_v21 = vld [vmem:[%s604_s1 + $0x20] sm:$0xff]  ;;  %vm253_vm4 = vcmask 523520  }
   0x6   :  { %427 = vmatpush3.msra.mxu1 %v32_v14  ;;  %v447_v17 = vpack.c.bf16 %v150_v16, %v149_v15  ;;  %v451_v24 = vpack.c.bf16 %v282_v21, %v281_v20  ;;  %v283_v29 = vld [vmem:[%s604_s1 + $0x28] sm:$0xff]  ;;  %v408_v41 = vld [vmem:[%s605_s2] ss:$0 sm:$0xff]  ;;  %s503_s2 = smov 32   ;;  %s504_s5 = smov [#allocation2]   ;;  %vm386_vm5 = vcmask 785920  }
   0x7   :  { %s394_s6 = sshll.u32 %s504_s5, 4  ;;  %s395_s6 = int_to_ptr.vmem [resolvable:$true] %s394_s6 }
   0x8   :  { %132 = vrot.lane.b32.xlu0 %v127_v3, %s499_s16  ;;  %264 = vrot.lane.b32.xlu1 %v127_v3, %s500_s17  ;;  %s475_s7 = scalar_lea.vmem %s395_s6, 256  ;;  %p480_p1 = scmp.lt.s32.totalorder %s395_s6, %s395_s6 }
   0x9   :  { %448 = vmatprep.subr.bf16.mxu1 %v447_v17  ;;  %452 = vmatprep.subr.bf16.mxu0 %v451_v24  ;;  %p476_p0 = scmp.ne.s32.totalorder %s395_s6, %s475_s7  ;;  %p481_p2 = scmp.lt.s32.totalorder %s475_s7, %s475_s7 }
   0xa   :  { %454 = vmatpush3.bf16.msra.mxu0 %v451_v24 }
   0xb   :  { %442 = vmatprep.subr.mxu0 %v283_v29  ;;  %p482_p3 = por %p481_p2, %p480_p1 }
   0xd   :  { %p483_p4 = pnand %p482_p3, %p476_p0 }
   0xe   :  { %443 = vmatpush3.msra.mxu0 %v283_v29 }
  0x76   :  { %v131_v4 = vpop.permute.xlu0 %130  ;;  %v263_v5 = vpop.permute.xlu1 %262 }
  0x77   :  { %v137_v6 = vsel %vm136_vm0, %v131_v4, 0.0  ;;  %v269_v7 = vsel %vm268_vm1, %v263_v5, 0.0 }
  0x78   :  { %138 = vadd.xlane.f32.xlu0 %v137_v6 }
  0x7a   :  { %v133_v8 = vpop.permute.xlu0 %132  ;;  %v265_v9 = vpop.permute.xlu1 %264 }
  0x7b   :  { %v140_v10 = vsel %vm136_vm0, %v133_v8, 0.0  ;;  %v272_v11 = vsel %vm268_vm1, %v265_v9, 0.0 }
  0x7c   :  { %270 = vadd.xlane.f32.xlu0 %v269_v7  ;;  %141 = vadd.xlane.f32.xlu1 %v140_v10 }
  0x80   :  { %273 = vadd.xlane.f32.xlu0 %v272_v11  ;;  %21 = vadd.xlane.f32.xlu1 %v20_v12 }
  0x84   :  { %24 = vadd.xlane.f32.xlu0 %v23_v13 }
 0x105   :  { %v139_v18 = vpop.xlane.xlu0 %138 }
 0x106   :  { %v143_v19 = vmax.f32 %v139_v18, 1e-24 }
 0x108   :  { %463 = vrsqrt.f32 %v143_v19 }
 0x109   :  { %v142_v22 = vpop.xlane.xlu1 %141  ;;  %v271_v23 = vpop.xlane.xlu0 %270 }
 0x10a   :  { %v144_v25 = vmax.f32 %v142_v22, 1e-24  ;;  %v275_v26 = vmax.f32 %v271_v23, 1e-24 }
 0x10c   :  { %465 = vrsqrt.f32 %v144_v25 }
 0x10d   :  { %467 = vrsqrt.f32 %v275_v26  ;;  %v274_v27 = vpop.xlane.xlu0 %273  ;;  %v22_v28 = vpop.xlane.xlu1 %21 }
 0x10e   :  { %v276_v30 = vmax.f32 %v274_v27, 1e-24  ;;  %v26_v31 = vmax.f32 %v22_v28, 1e-24 }
 0x110   :  { %469 = vrsqrt.f32 %v276_v30 }
 0x111   :  { %471 = vrsqrt.f32 %v26_v31  ;;  %v25_v32 = vpop.xlane.xlu0 %24 }
 0x112   :  { %v464_v33 = vpop.eup %463  ;;  %v27_v34 = vmax.f32 %v25_v32, 1e-24 }
 0x113   :  { %v147_v35 = vmul.f32 %v464_v33, %v530_v0 }
 0x114   :  { %473 = vrsqrt.f32 %v27_v34 }
 0x115   :  { %159 = vrot.lane.b32.xlu1 %v147_v35, %s499_s16 }
 0x116   :  { %v466_v36 = vpop.eup %465 }
 0x117   :  { %v468_v37 = vpop.eup %467  ;;  %v148_v38 = vmul.f32 %v466_v36, %v535_v1 }
 0x118   :  { %v279_v39 = vmul.f32 %v468_v37, %v530_v0 }
 0x119   :  { %161 = vrot.lane.b32.xlu0 %v148_v38, %s499_s16 }
 0x11a   :  { %v470_v40 = vpop.eup %469  ;;  %292 = vrot.lane.b32.xlu1 %v279_v39, %s500_s17 }
 0x11b   :  { %v472_v42 = vpop.eup %471  ;;  %v280_v43 = vmul.f32 %v470_v40, %v535_v1 }
 0x11c   :  { %v30_v44 = vmul.f32 %v472_v42, %v530_v0 }
 0x11d   :  { %163 = vrot.lane.b32.xlu0 %v408_v41, %s501_s30 }
 0x11e   :  { %v474_v45 = vpop.eup %473  ;;  %294 = vrot.lane.b32.xlu1 %v280_v43, %s500_s17  ;;  %428 = vmatprep.mubr.msk.f32.mxu1 %vm19_vm2, %v30_v44 }
 0x11f   :  { %v31_v46 = vmul.f32 %v474_v45, %v535_v1 }
 0x121   :  { %429 = vmatmul.mubr.msk.f32.vlgmr.msra.gmra.mrb[0].mxu1 %vm19_vm2, %v31_v46 }
 0x122   :  { %450 = vmatpush3.bf16.msra.mxu1 %v447_v17  ;;  %296 = vrot.lane.b32.xlu1 %v408_v41, %s502_s4 }
 0x187   :  { %v160_v47 = vpop.permute.xlu1 %159 }
 0x188   :  { %435 = vmatprep.mubr.msk.f32.mxu1 %vm136_vm0, %v160_v47 }
 0x18b   :  { %v162_v48 = vpop.permute.xlu0 %161 }
 0x18c   :  { %v293_v49 = vpop.permute.xlu1 %292  ;;  %436 = vmatmul.mubr.msk.f32.vlgmr.msra.gmra.mrb[2].mxu1 %vm136_vm0, %v162_v48 }
 0x18d   :  { %444 = vmatprep.mubr.msk.f32.mxu0 %vm268_vm1, %v293_v49 }
 0x18f   :  { %v164_v55 = vpop.permute.xlu0 %163 }
 0x190   :  { %v295_v50 = vpop.permute.xlu1 %294 }
 0x191   :  { %445 = vmatmul.mubr.msk.f32.vlgmr.msra.gmra.mrb[0].mxu0 %vm268_vm1, %v295_v50 }
 0x194   :  { %v297_v60 = vpop.permute.xlu1 %296 }
 0x1f4   :  { %v430_v51 = vpop.f32.mrb[0].mxu1 }
 0x1f5   :  { %v118_v52 = vadd.f32 %v430_v51, %v408_v41  ;;  %v112_v53 = vpop.f32.mrb[1].mxu1 }
 0x1f6   :  { %v113_v54 = vadd.f32 %v408_v41, %v112_v53 }
 0x1f7   :  { %123 = vst.msk [vmem:[#allocation2 + $0x8] sm:$0xff] %vm121_vm3, %v118_v52 }
 0x1f8   :  { %122 = vst.msk [vmem:[#allocation2] sm:$0xff] %vm121_vm3, %v113_v54 }
 0x25f   :  { %v437_v56 = vpop.f32.mrb[2].mxu1 }
 0x260   :  { %v242_v57 = vadd.f32 %v437_v56, %v164_v55  ;;  %v236_v58 = vpop.f32.mrb[3].mxu1 }
 0x261   :  { %v237_v59 = vadd.f32 %v236_v58, %v164_v55 }
 0x262   :  { %249 = vrot.lane.b32.xlu1 %v242_v57, %s503_s2 }
 0x263   :  { %247 = vrot.lane.b32.xlu0 %v237_v59, %s503_s2 }
 0x264   :  { %v446_v61 = vpop.f32.mrb[0].mxu0 }
 0x265   :  { %v375_v62 = vadd.f32 %v446_v61, %v297_v60  ;;  %v369_v63 = vpop.f32.mrb[1].mxu0 }
 0x266   :  { %v370_v0 = vadd.f32 %v369_v63, %v297_v60 }
 0x267   :  { %382 = vrot.lane.b32.xlu1 %v375_v62, %s502_s4 }
 0x268   :  { %380 = vrot.lane.b32.xlu0 %v370_v0, %s502_s4 }
 0x2d4   :  { %v250_v1 = vpop.permute.xlu1 %249 }
 0x2d5   :  { %255 = vst.msk [vmem:[#allocation2 + $0x8] sm:$0xff] %vm253_vm4, %v250_v1  ;;  %v248_v2 = vpop.permute.xlu0 %247 }
 0x2d6   :  { %254 = vst.msk [vmem:[#allocation2] sm:$0xff] %vm253_vm4, %v248_v2 }
 0x2d9   :  { %v383_v3 = vpop.permute.xlu1 %382 }
 0x2da   :  { %388 = vst.msk [vmem:[#allocation2 + $0x8] sm:$0xff] %vm386_vm5, %v383_v3  ;;  %v381_v4 = vpop.permute.xlu0 %380 }
 0x2db   :  { %387 = vst.msk [vmem:[#allocation2] sm:$0xff] %vm386_vm5, %v381_v4 }
 0x2dc   :  { %486 = shalt.err (!%p483_p4)
}
 0x2dd   :  { %s487_s10 = scalar_lea.hbm %s606_s3, 256 }
 0x2de   :  { %p488_p5 = scmp.ne.s32.totalorder %s606_s3, %s487_s10  ;;  %p491_p6 = scmp.lt.u32.totalorder %s487_s10, %s606_s3 }
 0x2e0   :  { %p493_p7 = pnand %p491_p6, %p488_p5 }
 0x2e2   :  { %496 = shalt.err (!%p493_p7)
}
 0x2e3   :  { %s505_s15 = smov 128   ;;  %s506_s16 = smov 8  }
 0x2e4   :  { %400 = dma.vmem_to_hbm [thread:$0]  %s395_s6, 256, %s606_s3, [#allocation3], %s505_s15, %s505_s15, %s506_s16  }
 0x2e5   :  { %497 = dma.done.wait [#allocation3], 256  }
 0x2e6   :  { %498 = vsyncadd [#allocation3], 4294967040 }
 0x2e7   :  { %404 = vsyncpa [#allocation3], 1 }

</bundles_post_ra>
